<compile_context>
chip_gen: v7x
topology: tpu7x:2x2x1
jax: 0.10.0
libtpu: 0.0.40
codegen_flags: <defaults>
</compile_context>

<pallas_src>
import jax
import jax.numpy as jnp
import numpy as np
from jax.experimental import pallas as pl
from jax.experimental.pallas import tpu as pltpu


def _round_up(n, m):
    return -(-n // m) * m


def _make_kernel(levels, hidden, in_pad, tile):
    def kernel(x_ref, hw_ref, hb_ref, ww_ref, wb_ref, o_ref):
        feats = x_ref[...].astype(jnp.float32)            # [tile, in_pad]
        acc = jnp.zeros((tile, hidden), jnp.float32)      # sum_l softmax(...)

        # NOTE: neighbor "aggregation" in the PyTorch reference is a no-op
        # (out-of-place .add with discarded result), so every vertex row is
        # independent -> plain tall matmuls, no adjacency needed.
        for lvl in range(levels):                         # static unroll
            hw = hw_ref[lvl]                              # [in_pad, hidden]
            hb = hb_ref[lvl]                              # [1, hidden]
            ww = ww_ref[lvl]                              # [hidden, hidden]
            wb = wb_ref[lvl]                              # [1, hidden]

            h = jnp.dot(feats, hw, preferred_element_type=jnp.float32) + hb
            h = jnp.maximum(h, 0.0)                       # activation_func = ReLU

            s = jnp.dot(h, ww, preferred_element_type=jnp.float32) + wb
            s = s - jnp.max(s, axis=-1, keepdims=True)    # stable softmax
            e = jnp.exp(s)
            denom = jnp.sum(e, axis=-1, keepdims=True)
            inv = pl.reciprocal(denom, approx=True)       # EUP slot (cheap)
            inv = inv * (2.0 - denom * inv)               # 1 Newton step -> f32 acc
            acc = acc + e * inv

            if hidden < in_pad:                           # only when F > hidden
                feats = jnp.concatenate(
                    [h, jnp.zeros((tile, in_pad - hidden), jnp.float32)], axis=-1)
            else:
                feats = h

        o_ref[...] = acc                                  # [tile, hidden]

    return kernel


def molec_fingerprint_forward(x, level_params, out_params, *, levels, hidden):
    """x: [G, V, F] vertex features.
    level_params: list of (H_w [in, hidden], H_b [1, hidden],
                           W_w [hidden, hidden], W_b [1, hidden]) pre-transposed.
    out_params: (fc_w [hidden, out_dim], fc_b [1, out_dim]).
    Returns [G, out_dim]."""
    G, V, F = x.shape
    rows = G * V
    in_pad = max(F, hidden)

    # Row tile: 256 for large inputs (fills v6e/v7x MXU, multiple of 128 for
    # v5e); for tiny inputs just round row count up to a sublane multiple of 8.
    tile = 256 if rows >= 256 else _round_up(rows, 8)
    rows_pad = _round_up(rows, tile)

    # Flatten vertices; zero-pad feature dim to in_pad and rows to rows_pad.
    xf = x.reshape(rows, F).astype(jnp.float32)
    xf = jnp.pad(xf, ((0, rows_pad - rows), (0, in_pad - F)))

    # Pack per-level weights into stacked resident operands.
    hw_stack = jnp.stack([
        jnp.pad(hw.astype(jnp.float32), ((0, in_pad - hw.shape[0]), (0, 0)))
        for (hw, _, _, _) in level_params])                       # [L, in_pad, H]
    hb_stack = jnp.stack([hb.astype(jnp.float32) for (_, hb, _, _) in level_params])
    ww_stack = jnp.stack([ww.astype(jnp.float32) for (_, _, ww, _) in level_params])
    wb_stack = jnp.stack([wb.astype(jnp.float32) for (_, _, _, wb) in level_params])

    grid = (rows_pad // tile,)
    p_rows = pl.pallas_call(
        _make_kernel(levels, hidden, in_pad, tile),
        out_shape=jax.ShapeDtypeStruct((rows_pad, hidden), jnp.float32),
        grid=grid,
        in_specs=[
            pl.BlockSpec((tile, in_pad), lambda i: (i, 0)),
            pl.BlockSpec(hw_stack.shape, lambda i: (0, 0, 0)),
            pl.BlockSpec(hb_stack.shape, lambda i: (0, 0, 0)),
            pl.BlockSpec(ww_stack.shape, lambda i: (0, 0, 0)),
            pl.BlockSpec(wb_stack.shape, lambda i: (0, 0, 0)),
        ],
        out_specs=pl.BlockSpec((tile, hidden), lambda i: (i, 0)),
        compiler_params=pltpu.CompilerParams(
            dimension_semantics=("parallel",)),
    )(xf, hw_stack, hb_stack, ww_stack, wb_stack)

    # Per-graph fingerprint = sum over vertices (padded rows are sliced off),
    # then the trivial hidden->out_dim projection in plain JAX.
    fp = p_rows[:rows].reshape(G, V, hidden).sum(axis=1)          # [G, hidden]
    fc_w, fc_b = out_params
    return fp @ fc_w + fc_b                                       # [G, out_dim]


# ----- pure-JAX reference for verification -----
def reference_forward(x, level_params, out_params):
    feats = x.astype(jnp.float32)                          # [G, V, F]
    G = x.shape[0]
    hidden = level_params[0][0].shape[1]
    fp = jnp.zeros((G, hidden), jnp.float32)
    for (hw, hb, ww, wb) in level_params:
        h = jnp.maximum(feats @ hw + hb, 0.0)              # [G, V, hidden]
        s = h @ ww + wb
        p = jax.nn.softmax(s, axis=-1)
        fp = fp + jnp.sum(p, axis=1)
        feats = h
    fc_w, fc_b = out_params
    return fp @ fc_w + fc_b


# ----- deterministic parameter init (PyTorch nn.Linear-style uniform) -----
def init_linear(key, fan_in, fan_out):
    kw, kb = jax.random.split(key)
    bound = 1.0 / np.sqrt(fan_in)
    w = jax.random.uniform(kw, (fan_in, fan_out), jnp.float32, -bound, bound)  # [in, out]
    b = jax.random.uniform(kb, (1, fan_out), jnp.float32, -bound, bound)
    return w, b


if __name__ == "__main__":
    levels = 3
    nfeatures = 16
    hidden = 32
    num_graphs = 2
    num_vertices = 8     # vertices per graph (dense synthetic batch)
    out_dim = 1          # task = 'regression'

    key = jax.random.PRNGKey(0)
    key, kx = jax.random.split(key)
    x = jax.random.normal(kx, (num_graphs, num_vertices, nfeatures), jnp.float32)

    level_params = []
    for lvl in range(1, levels + 1):
        key, kh, kw = jax.random.split(key, 3)
        h_in = nfeatures if lvl == 1 else hidden          # H_1: nfeatures->hidden
        hw, hb = init_linear(kh, h_in, hidden)            # H_lvl
        ww, wb = init_linear(kw, hidden, hidden)          # W_lvl
        level_params.append((hw, hb, ww, wb))

    key, ko = jax.random.split(key)
    out_params = init_linear(ko, hidden, out_dim)         # fc_output

    y = molec_fingerprint_forward(
        x, level_params, out_params, levels=levels, hidden=hidden
    )
    y = jax.block_until_ready(y)

    y_ref = jax.block_until_ready(reference_forward(x, level_params, out_params))
    np.testing.assert_allclose(np.asarray(y), np.asarray(y_ref), rtol=1e-4, atol=1e-4)

    print("KERNEL_OK")
</pallas_src>

<mosaic_0001>
module attributes {stable_mosaic.version = 11 : i64} {
  func.func @kernel(%arg0: i32, %arg1: memref<16x32xf32, #tpu.memory_space<vmem>>, %arg2: memref<3x32x32xf32, #tpu.memory_space<vmem>>, %arg3: memref<3x1x32xf32, #tpu.memory_space<vmem>>, %arg4: memref<3x32x32xf32, #tpu.memory_space<vmem>>, %arg5: memref<3x1x32xf32, #tpu.memory_space<vmem>>, %arg6: memref<16x32xf32, #tpu.memory_space<vmem>>) attributes {dimension_semantics = [#tpu.dimension_semantics<parallel>], iteration_bounds = array<i64: 1>, scalar_prefetch = 0 : i64, scratch_operands = 0 : i64, tpu.core_type = #tpu.core_type<tc>, window_params = [{transform_indices = @transform_0, window_bounds = array<i64: 16, 32>}, {pipeline_mode = #tpu.pipeline_mode<synchronous>, transform_indices = @transform_1, window_bounds = array<i64: 3, 32, 32>}, {pipeline_mode = #tpu.pipeline_mode<synchronous>, transform_indices = @transform_2, window_bounds = array<i64: 3, 1, 32>}, {pipeline_mode = #tpu.pipeline_mode<synchronous>, transform_indices = @transform_3, window_bounds = array<i64: 3, 32, 32>}, {pipeline_mode = #tpu.pipeline_mode<synchronous>, transform_indices = @transform_4, window_bounds = array<i64: 3, 1, 32>}, {transform_indices = @transform_5, window_bounds = array<i64: 16, 32>}]} {
    %c0 = arith.constant 0 : index
    %c0_0 = arith.constant 0 : index
    %0 = vector.load %arg1[%c0, %c0_0] : memref<16x32xf32, #tpu.memory_space<vmem>>, vector<16x32xf32>
    %cst = arith.constant 0.000000e+00 : f32
    %1 = vector.broadcast %cst : f32 to vector<16x32xf32>
    %c0_1 = arith.constant 0 : index
    %c0_2 = arith.constant 0 : index
    %c0_3 = arith.constant 0 : index
    %2 = vector.load %arg2[%c0_1, %c0_2, %c0_3] : memref<3x32x32xf32, #tpu.memory_space<vmem>>, vector<1x32x32xf32>
    %3 = vector.shape_cast %2 : vector<1x32x32xf32> to vector<32x32xf32>
    %c0_4 = arith.constant 0 : index
    %c0_5 = arith.constant 0 : index
    %c0_6 = arith.constant 0 : index
    %4 = vector.load %arg3[%c0_4, %c0_5, %c0_6] : memref<3x1x32xf32, #tpu.memory_space<vmem>>, vector<1x1x32xf32>
    %5 = vector.shape_cast %4 : vector<1x1x32xf32> to vector<1x32xf32>
    %c0_7 = arith.constant 0 : index
    %c0_8 = arith.constant 0 : index
    %c0_9 = arith.constant 0 : index
    %6 = vector.load %arg4[%c0_7, %c0_8, %c0_9] : memref<3x32x32xf32, #tpu.memory_space<vmem>>, vector<1x32x32xf32>
    %7 = vector.shape_cast %6 : vector<1x32x32xf32> to vector<32x32xf32>
    %c0_10 = arith.constant 0 : index
    %c0_11 = arith.constant 0 : index
    %c0_12 = arith.constant 0 : index
    %8 = vector.load %arg5[%c0_10, %c0_11, %c0_12] : memref<3x1x32xf32, #tpu.memory_space<vmem>>, vector<1x1x32xf32>
    %9 = vector.shape_cast %8 : vector<1x1x32xf32> to vector<1x32xf32>
    %cst_13 = arith.constant dense<0.000000e+00> : vector<16x32xf32>
    %10 = tpu.matmul %0, %3, %cst_13 {dimension_numbers = #tpu.dot_dimension_numbers<[1], [0], [0], [1], [0, 0, 1, 1], [], []>} : vector<16x32xf32>, vector<32x32xf32>, vector<16x32xf32> -> vector<16x32xf32>
    %11 = vector.broadcast %5 : vector<1x32xf32> to vector<16x32xf32>
    %12 = arith.addf %10, %11 : vector<16x32xf32>
    %cst_14 = arith.constant 0.000000e+00 : f32
    %13 = vector.broadcast %cst_14 : f32 to vector<16x32xf32>
    %14 = arith.maximumf %12, %13 : vector<16x32xf32>
    %cst_15 = arith.constant dense<0.000000e+00> : vector<16x32xf32>
    %15 = tpu.matmul %14, %7, %cst_15 {dimension_numbers = #tpu.dot_dimension_numbers<[1], [0], [0], [1], [0, 0, 1, 1], [], []>} : vector<16x32xf32>, vector<32x32xf32>, vector<16x32xf32> -> vector<16x32xf32>
    %16 = vector.broadcast %9 : vector<1x32xf32> to vector<16x32xf32>
    %17 = arith.addf %15, %16 : vector<16x32xf32>
    %cst_16 = arith.constant dense<0xFF800000> : vector<16xf32>
    %18 = vector.multi_reduction <maximumf>, %17, %cst_16 [1] : vector<16x32xf32> to vector<16xf32>
    %19 = vector.shape_cast %18 : vector<16xf32> to vector<16x1xf32>
    %20 = vector.broadcast %19 : vector<16x1xf32> to vector<16x32xf32>
    %21 = arith.subf %17, %20 : vector<16x32xf32>
    %22 = math.exp %21 : vector<16x32xf32>
    %cst_17 = arith.constant dense<0.000000e+00> : vector<16xf32>
    %23 = vector.multi_reduction <add>, %22, %cst_17 [1] : vector<16x32xf32> to vector<16xf32>
    %24 = vector.shape_cast %23 : vector<16xf32> to vector<16x1xf32>
    %25 = tpu.reciprocal %24 {approx = true} : vector<16x1xf32> -> vector<16x1xf32>
    %26 = arith.mulf %24, %25 : vector<16x1xf32>
    %cst_18 = arith.constant 2.000000e+00 : f32
    %27 = vector.broadcast %cst_18 : f32 to vector<16x1xf32>
    %28 = arith.subf %27, %26 : vector<16x1xf32>
    %29 = arith.mulf %25, %28 : vector<16x1xf32>
    %30 = vector.broadcast %29 : vector<16x1xf32> to vector<16x32xf32>
    %31 = arith.mulf %22, %30 : vector<16x32xf32>
    %32 = arith.addf %1, %31 : vector<16x32xf32>
    %c1 = arith.constant 1 : index
    %c0_19 = arith.constant 0 : index
    %c0_20 = arith.constant 0 : index
    %33 = vector.load %arg2[%c1, %c0_19, %c0_20] : memref<3x32x32xf32, #tpu.memory_space<vmem>>, vector<1x32x32xf32>
    %34 = vector.shape_cast %33 : vector<1x32x32xf32> to vector<32x32xf32>
    %c1_21 = arith.constant 1 : index
    %c0_22 = arith.constant 0 : index
    %c0_23 = arith.constant 0 : index
    %35 = vector.load %arg3[%c1_21, %c0_22, %c0_23] : memref<3x1x32xf32, #tpu.memory_space<vmem>>, vector<1x1x32xf32>
    %36 = vector.shape_cast %35 : vector<1x1x32xf32> to vector<1x32xf32>
    %c1_24 = arith.constant 1 : index
    %c0_25 = arith.constant 0 : index
    %c0_26 = arith.constant 0 : index
    %37 = vector.load %arg4[%c1_24, %c0_25, %c0_26] : memref<3x32x32xf32, #tpu.memory_space<vmem>>, vector<1x32x32xf32>
    %38 = vector.shape_cast %37 : vector<1x32x32xf32> to vector<32x32xf32>
    %c1_27 = arith.constant 1 : index
    %c0_28 = arith.constant 0 : index
    %c0_29 = arith.constant 0 : index
    %39 = vector.load %arg5[%c1_27, %c0_28, %c0_29] : memref<3x1x32xf32, #tpu.memory_space<vmem>>, vector<1x1x32xf32>
    %40 = vector.shape_cast %39 : vector<1x1x32xf32> to vector<1x32xf32>
    %cst_30 = arith.constant dense<0.000000e+00> : vector<16x32xf32>
    %41 = tpu.matmul %14, %34, %cst_30 {dimension_numbers = #tpu.dot_dimension_numbers<[1], [0], [0], [1], [0, 0, 1, 1], [], []>} : vector<16x32xf32>, vector<32x32xf32>, vector<16x32xf32> -> vector<16x32xf32>
    %42 = vector.broadcast %36 : vector<1x32xf32> to vector<16x32xf32>
    %43 = arith.addf %41, %42 : vector<16x32xf32>
    %cst_31 = arith.constant 0.000000e+00 : f32
    %44 = vector.broadcast %cst_31 : f32 to vector<16x32xf32>
    %45 = arith.maximumf %43, %44 : vector<16x32xf32>
    %cst_32 = arith.constant dense<0.000000e+00> : vector<16x32xf32>
    %46 = tpu.matmul %45, %38, %cst_32 {dimension_numbers = #tpu.dot_dimension_numbers<[1], [0], [0], [1], [0, 0, 1, 1], [], []>} : vector<16x32xf32>, vector<32x32xf32>, vector<16x32xf32> -> vector<16x32xf32>
    %47 = vector.broadcast %40 : vector<1x32xf32> to vector<16x32xf32>
    %48 = arith.addf %46, %47 : vector<16x32xf32>
    %cst_33 = arith.constant dense<0xFF800000> : vector<16xf32>
    %49 = vector.multi_reduction <maximumf>, %48, %cst_33 [1] : vector<16x32xf32> to vector<16xf32>
    %50 = vector.shape_cast %49 : vector<16xf32> to vector<16x1xf32>
    %51 = vector.broadcast %50 : vector<16x1xf32> to vector<16x32xf32>
    %52 = arith.subf %48, %51 : vector<16x32xf32>
    %53 = math.exp %52 : vector<16x32xf32>
    %cst_34 = arith.constant dense<0.000000e+00> : vector<16xf32>
    %54 = vector.multi_reduction <add>, %53, %cst_34 [1] : vector<16x32xf32> to vector<16xf32>
    %55 = vector.shape_cast %54 : vector<16xf32> to vector<16x1xf32>
    %56 = tpu.reciprocal %55 {approx = true} : vector<16x1xf32> -> vector<16x1xf32>
    %57 = arith.mulf %55, %56 : vector<16x1xf32>
    %cst_35 = arith.constant 2.000000e+00 : f32
    %58 = vector.broadcast %cst_35 : f32 to vector<16x1xf32>
    %59 = arith.subf %58, %57 : vector<16x1xf32>
    %60 = arith.mulf %56, %59 : vector<16x1xf32>
    %61 = vector.broadcast %60 : vector<16x1xf32> to vector<16x32xf32>
    %62 = arith.mulf %53, %61 : vector<16x32xf32>
    %63 = arith.addf %32, %62 : vector<16x32xf32>
    %c2 = arith.constant 2 : index
    %c0_36 = arith.constant 0 : index
    %c0_37 = arith.constant 0 : index
    %64 = vector.load %arg2[%c2, %c0_36, %c0_37] : memref<3x32x32xf32, #tpu.memory_space<vmem>>, vector<1x32x32xf32>
    %65 = vector.shape_cast %64 : vector<1x32x32xf32> to vector<32x32xf32>
    %c2_38 = arith.constant 2 : index
    %c0_39 = arith.constant 0 : index
    %c0_40 = arith.constant 0 : index
    %66 = vector.load %arg3[%c2_38, %c0_39, %c0_40] : memref<3x1x32xf32, #tpu.memory_space<vmem>>, vector<1x1x32xf32>
    %67 = vector.shape_cast %66 : vector<1x1x32xf32> to vector<1x32xf32>
    %c2_41 = arith.constant 2 : index
    %c0_42 = arith.constant 0 : index
    %c0_43 = arith.constant 0 : index
    %68 = vector.load %arg4[%c2_41, %c0_42, %c0_43] : memref<3x32x32xf32, #tpu.memory_space<vmem>>, vector<1x32x32xf32>
    %69 = vector.shape_cast %68 : vector<1x32x32xf32> to vector<32x32xf32>
    %c2_44 = arith.constant 2 : index
    %c0_45 = arith.constant 0 : index
    %c0_46 = arith.constant 0 : index
    %70 = vector.load %arg5[%c2_44, %c0_45, %c0_46] : memref<3x1x32xf32, #tpu.memory_space<vmem>>, vector<1x1x32xf32>
    %71 = vector.shape_cast %70 : vector<1x1x32xf32> to vector<1x32xf32>
    %cst_47 = arith.constant dense<0.000000e+00> : vector<16x32xf32>
    %72 = tpu.matmul %45, %65, %cst_47 {dimension_numbers = #tpu.dot_dimension_numbers<[1], [0], [0], [1], [0, 0, 1, 1], [], []>} : vector<16x32xf32>, vector<32x32xf32>, vector<16x32xf32> -> vector<16x32xf32>
    %73 = vector.broadcast %67 : vector<1x32xf32> to vector<16x32xf32>
    %74 = arith.addf %72, %73 : vector<16x32xf32>
    %cst_48 = arith.constant 0.000000e+00 : f32
    %75 = vector.broadcast %cst_48 : f32 to vector<16x32xf32>
    %76 = arith.maximumf %74, %75 : vector<16x32xf32>
    %cst_49 = arith.constant dense<0.000000e+00> : vector<16x32xf32>
    %77 = tpu.matmul %76, %69, %cst_49 {dimension_numbers = #tpu.dot_dimension_numbers<[1], [0], [0], [1], [0, 0, 1, 1], [], []>} : vector<16x32xf32>, vector<32x32xf32>, vector<16x32xf32> -> vector<16x32xf32>
    %78 = vector.broadcast %71 : vector<1x32xf32> to vector<16x32xf32>
    %79 = arith.addf %77, %78 : vector<16x32xf32>
    %cst_50 = arith.constant dense<0xFF800000> : vector<16xf32>
    %80 = vector.multi_reduction <maximumf>, %79, %cst_50 [1] : vector<16x32xf32> to vector<16xf32>
    %81 = vector.shape_cast %80 : vector<16xf32> to vector<16x1xf32>
    %82 = vector.broadcast %81 : vector<16x1xf32> to vector<16x32xf32>
    %83 = arith.subf %79, %82 : vector<16x32xf32>
    %84 = math.exp %83 : vector<16x32xf32>
    %cst_51 = arith.constant dense<0.000000e+00> : vector<16xf32>
    %85 = vector.multi_reduction <add>, %84, %cst_51 [1] : vector<16x32xf32> to vector<16xf32>
    %86 = vector.shape_cast %85 : vector<16xf32> to vector<16x1xf32>
    %87 = tpu.reciprocal %86 {approx = true} : vector<16x1xf32> -> vector<16x1xf32>
    %88 = arith.mulf %86, %87 : vector<16x1xf32>
    %cst_52 = arith.constant 2.000000e+00 : f32
    %89 = vector.broadcast %cst_52 : f32 to vector<16x1xf32>
    %90 = arith.subf %89, %88 : vector<16x1xf32>
    %91 = arith.mulf %87, %90 : vector<16x1xf32>
    %92 = vector.broadcast %91 : vector<16x1xf32> to vector<16x32xf32>
    %93 = arith.mulf %84, %92 : vector<16x32xf32>
    %94 = arith.addf %63, %93 : vector<16x32xf32>
    %c0_53 = arith.constant 0 : index
    %c0_54 = arith.constant 0 : index
    %95 = vector.load %arg6[%c0_53, %c0_54] : memref<16x32xf32, #tpu.memory_space<vmem>>, vector<16x32xf32>
    tpu.vector_store %arg6[%c0_53, %c0_54], %94 {strides = array<i32>} : memref<16x32xf32, #tpu.memory_space<vmem>>, vector<16x32xf32>,
    return
  }
  func.func @transform_0(%arg0: i32) -> (i32, i32) {
    %c0_i32 = arith.constant 0 : i32
    %c0_i32_0 = arith.constant 0 : i32
    return %arg0, %c0_i32 : i32, i32
  }
  func.func @transform_1(%arg0: i32) -> (i32, i32, i32) {
    %c0_i32 = arith.constant 0 : i32
    %c0_i32_0 = arith.constant 0 : i32
    %c0_i32_1 = arith.constant 0 : i32
    %c0_i32_2 = arith.constant 0 : i32
    return %c0_i32, %c0_i32_0, %c0_i32_1 : i32, i32, i32
  }
  func.func @transform_2(%arg0: i32) -> (i32, i32, i32) {
    %c0_i32 = arith.constant 0 : i32
    %c0_i32_0 = arith.constant 0 : i32
    %c0_i32_1 = arith.constant 0 : i32
    %c0_i32_2 = arith.constant 0 : i32
    return %c0_i32, %c0_i32_0, %c0_i32_1 : i32, i32, i32
  }
  func.func @transform_3(%arg0: i32) -> (i32, i32, i32) {
    %c0_i32 = arith.constant 0 : i32
    %c0_i32_0 = arith.constant 0 : i32
    %c0_i32_1 = arith.constant 0 : i32
    %c0_i32_2 = arith.constant 0 : i32
    return %c0_i32, %c0_i32_0, %c0_i32_1 : i32, i32, i32
  }
  func.func @transform_4(%arg0: i32) -> (i32, i32, i32) {
    %c0_i32 = arith.constant 0 : i32
    %c0_i32_0 = arith.constant 0 : i32
    %c0_i32_1 = arith.constant 0 : i32
    %c0_i32_2 = arith.constant 0 : i32
    return %c0_i32, %c0_i32_0, %c0_i32_1 : i32, i32, i32
  }
  func.func @transform_5(%arg0: i32) -> (i32, i32) {
    %c0_i32 = arith.constant 0 : i32
    %c0_i32_0 = arith.constant 0 : i32
    return %arg0, %c0_i32 : i32, i32
  }
}

</mosaic_0001>

<bundles_post_ra>
// kernel: tpu_custom_call.1
= control target key start
LH: loop header
LB: loop body
LE: loop exit
PB: predicated region body
PF: predicated region fallthrough
CT: control target
= control target key end

     0   :  { %10 = vsyncpa [#allocation3], 0  ;;  %s1180_s0 = inlined_call_operand.hbm [shape: f32[16,32], index: 0, kind: input, shape index: {}]   ;;  %s1181_s1 = inlined_call_operand.hbm [shape: f32[3,32,32], index: 1, kind: input, shape index: {}]   ;;  %s1182_s2 = inlined_call_operand.vmem [shape: f32[3,1,32], index: 2, kind: input, shape index: {}]   ;;  %s1183_s3 = inlined_call_operand.hbm [shape: f32[3,32,32], index: 3, kind: input, shape index: {}]   ;;  %s1184_s4 = inlined_call_operand.vmem [shape: f32[3,1,32], index: 4, kind: input, shape index: {}]   ;;  %s1185_s5 = inlined_call_operand.hbm [shape: f32[16,32], index: 5, kind: output, shape index: {}]  }
   0x1   :  { %11 = vsyncpa [#allocation6], 0 }
   0x2   :  { %12 = vsyncpa [#allocation4], 0  ;;  %s1025_s18 = smov [#allocation5]   ;;  %s1026_s20 = smov [#allocation2]  }
   0x3   :  { %s30_s19 = sshll.u32 %s1025_s18, 4  ;;  %s18_s21 = sshll.u32 %s1026_s20, 4  ;;  %s31_s19 = int_to_ptr.vmem [resolvable:$true] %s30_s19  ;;  %s1061_s21 = int_to_ptr.vmem [resolvable:$true] %s18_s21 }
   0x4   :  { %s931_s24 = scalar_lea.hbm %s1181_s1, 1536 }
   0x5   :  { %p932_p0 = scmp.ne.s32.totalorder %s1181_s1, %s931_s24  ;;  %p935_p1 = scmp.lt.u32.totalorder %s931_s24, %s1181_s1 }
   0x7   :  { %p937_p2 = pnand %p935_p1, %p932_p0 }
   0x9   :  { %940 = shalt.err (!%p937_p2)
}
   0xa   :  { %s941_s29 = scalar_lea.vmem %s31_s19, 1536  ;;  %p946_p4 = scmp.lt.s32.totalorder %s31_s19, %s31_s19 }
   0xb   :  { %p942_p3 = scmp.ne.s32.totalorder %s31_s19, %s941_s29  ;;  %p947_p5 = scmp.lt.s32.totalorder %s941_s29, %s941_s29 }
   0xd   :  { %p948_p6 = por %p947_p5, %p946_p4 }
   0xf   :  { %p949_p7 = pnand %p948_p6, %p942_p3 }
  0x11   :  { %952 = shalt.err (!%p949_p7)
}
  0x12   :  { %s1027_s30 = smov 128   ;;  %s1028_s6 = smov 8  }
  0x13   :  { %36 = dma.hbm_to_vmem [thread:$0]  %s1181_s1, 1536, %s31_s19, [#allocation6], %s1027_s30, %s1027_s30, %s1028_s6  }
  0x14   :  { %s953_s11 = scalar_lea.hbm %s1180_s0, 256 }
  0x15   :  { %p954_p8 = scmp.ne.s32.totalorder %s1180_s0, %s953_s11  ;;  %p957_p9 = scmp.lt.u32.totalorder %s953_s11, %s1180_s0 }
  0x17   :  { %p959_p10 = pnand %p957_p9, %p954_p8 }
  0x19   :  { %962 = shalt.err (!%p959_p10)
}
  0x1a   :  { %s963_s16 = scalar_lea.vmem %s1061_s21, 256  ;;  %p968_p12 = scmp.lt.s32.totalorder %s1061_s21, %s1061_s21 }
  0x1b   :  { %p964_p11 = scmp.ne.s32.totalorder %s1061_s21, %s963_s16  ;;  %p969_p13 = scmp.lt.s32.totalorder %s963_s16, %s963_s16 }
  0x1d   :  { %p970_p0 = por %p969_p13, %p968_p12 }
  0x1f   :  { %p971_p1 = pnand %p970_p0, %p964_p11 }
  0x21   :  { %974 = shalt.err (!%p971_p1)
}
  0x22   :  { %24 = dma.hbm_to_vmem [thread:$0]  %s1180_s0, 256, %s1061_s21, [#allocation3], %s1027_s30, %s1027_s30, %s1028_s6  }
  0x23   :  { %s1029_s18 = smov [#allocation7]   ;;  %s975_s23 = scalar_lea.hbm %s1183_s3, 1536 }
  0x24   :  { %s44_s19 = sshll.u32 %s1029_s18, 4  ;;  %p976_p2 = scmp.ne.s32.totalorder %s1183_s3, %s975_s23  ;;  %s45_s19 = int_to_ptr.vmem [resolvable:$true] %s44_s19 }
  0x25   :  { %p979_p3 = scmp.lt.u32.totalorder %s975_s23, %s1183_s3 }
  0x27   :  { %p981_p4 = pnand %p979_p3, %p976_p2 }
  0x29   :  { %984 = shalt.err (!%p981_p4)
}
  0x2a   :  { %s985_s28 = scalar_lea.vmem %s45_s19, 1536  ;;  %p990_p6 = scmp.lt.s32.totalorder %s45_s19, %s45_s19 }
  0x2b   :  { %p986_p5 = scmp.ne.s32.totalorder %s45_s19, %s985_s28  ;;  %p991_p7 = scmp.lt.s32.totalorder %s985_s28, %s985_s28 }
  0x2d   :  { %p992_p8 = por %p991_p7, %p990_p6 }
  0x2f   :  { %p993_p9 = pnand %p992_p8, %p986_p5 }
  0x31   :  { %996 = shalt.err (!%p993_p9)
}
  0x32   :  { %50 = dma.hbm_to_vmem [thread:$0]  %s1183_s3, 1536, %s45_s19, [#allocation6], %s1027_s30, %s1027_s30, %s1028_s6  }
  0x33   :  { %1019 = dma.done.wait [#allocation3], 256  }
  0x34   :  { %1020 = vsyncadd [#allocation3], 4294967040 }
  0x35   :  { %1021 = dma.done.wait [#allocation6], 3072  }
  0x36   :  { %1022 = vsyncadd [#allocation6], 4294964224  ;;  %vm80_vm0 = vcmask 261120   ;;  %v64_v0 = vld [vmem:[#allocation5] sm:$0xff]  ;;  %v65_v1 = vld [vmem:[#allocation5 + $0x8] sm:$0xff] }
  0x37   :  { %v66_v2 = vld [vmem:[#allocation5 + $0x10] sm:$0xff]  ;;  %v853_v3 = vpack.c.bf16 %v65_v1, %v64_v0  ;;  %v67_v4 = vld [vmem:[#allocation5 + $0x18] sm:$0xff]  ;;  %v69_v7 = vld [vmem:[#allocation7] sm:$0xff] }
  0x38   :  { %v62_v5 = vld [vmem:[#allocation2] sm:$0xff]  ;;  %v857_v6 = vpack.c.bf16 %v67_v4, %v66_v2  ;;  %v70_v8 = vld [vmem:[#allocation7 + $0x8] sm:$0xff]  ;;  %v282_v9 = vld [vmem:[#allocation5 + $0x20] sm:$0xff] }
  0x39   :  { %795 = vmatprep.mubr.msk.f32.mxu0 %vm80_vm0, %v62_v5  ;;  %854 = vmatprep.subr.bf16.mxu0 %v853_v3  ;;  %v861_v10 = vpack.c.bf16 %v70_v8, %v69_v7  ;;  %v283_v11 = vld [vmem:[#allocation5 + $0x28] sm:$0xff]  ;;  %v63_v13 = vld [vmem:[#allocation2 + $0x8] sm:$0xff]  ;;  %v71_v14 = vld [vmem:[#allocation7 + $0x10] sm:$0xff] }
  0x3a   :  { %856 = vmatpush3.bf16.msra.mxu0 %v853_v3  ;;  %v869_v12 = vpack.c.bf16 %v283_v11, %v282_v9  ;;  %v72_v15 = vld [vmem:[#allocation7 + $0x18] sm:$0xff]  ;;  %v284_v17 = vld [vmem:[#allocation5 + $0x30] sm:$0xff]  ;;  %v289_v20 = vld [vmem:[#allocation7 + $0x20] sm:$0xff] }
  0x3b   :  { %858 = vmatprep.subr.bf16.mxu0 %v857_v6  ;;  %862 = vmatprep.subr.bf16.mxu1 %v861_v10  ;;  %v865_v16 = vpack.c.bf16 %v72_v15, %v71_v14  ;;  %v285_v18 = vld [vmem:[#allocation5 + $0x38] sm:$0xff]  ;;  %v290_v21 = vld [vmem:[#allocation7 + $0x28] sm:$0xff]  ;;  %v496_v22 = vld [vmem:[#allocation5 + $0x40] sm:$0xff] }
  0x3c   :  { %864 = vmatpush3.bf16.msra.mxu1 %v861_v10  ;;  %v873_v19 = vpack.c.bf16 %v285_v18, %v284_v17  ;;  %v877_v23 = vpack.c.bf16 %v290_v21, %v289_v20  ;;  %v497_v24 = vld [vmem:[#allocation5 + $0x48] sm:$0xff]  ;;  %v729_v26 = vld [vmem:[%s1182_s2] ss:$0 sm:$0xff]  ;;  %v292_v34 = vld [vmem:[#allocation7 + $0x38] sm:$0xff] }
  0x3d   :  { %866 = vmatprep.subr.bf16.mxu1 %v865_v16  ;;  %v885_v25 = vpack.c.bf16 %v497_v24, %v496_v22  ;;  %v291_v33 = vld [vmem:[#allocation7 + $0x30] sm:$0xff]  ;;  %v499_v36 = vld [vmem:[#allocation5 + $0x58] sm:$0xff]  ;;  %v503_v53 = vld [vmem:[#allocation7 + $0x40] sm:$0xff] }
  0x3e   :  { %860 = vmatpush3.bf16.msra.mxu0 %v857_v6  ;;  %v498_v35 = vld [vmem:[#allocation5 + $0x50] sm:$0xff]  ;;  %v881_v37 = vpack.c.bf16 %v292_v34, %v291_v33  ;;  %v504_v54 = vld [vmem:[#allocation7 + $0x48] sm:$0xff]  ;;  %v506_v57 = vld [vmem:[#allocation7 + $0x58] sm:$0xff] }
  0x3f   :  { %870 = vmatprep.subr.bf16.mxu0 %v869_v12  ;;  %v889_v38 = vpack.c.bf16 %v499_v36, %v498_v35  ;;  %v732_v39 = vld [vmem:[%s1184_s4] ss:$0 sm:$0xff]  ;;  %v737_v40 = vld [vmem:[%s1182_s2 + $0x1] ss:$0 sm:$0xff]  ;;  %v893_v55 = vpack.c.bf16 %v504_v54, %v503_v53  ;;  %v745_v60 = vld [vmem:[%s1182_s2 + $0x2] ss:$0 sm:$0xff] }
  0x40   :  { %868 = vmatpush3.bf16.msra.mxu1 %v865_v16  ;;  %v505_v56 = vld [vmem:[#allocation7 + $0x50] sm:$0xff] }
  0x41   :  { %796 = vmatmul.mubr.msk.f32.vlgmr.msra.gmra.mrb[0].mxu0 %vm80_vm0, %v63_v13  ;;  %878 = vmatprep.subr.bf16.mxu1 %v877_v23  ;;  %v897_v58 = vpack.c.bf16 %v506_v57, %v505_v56  ;;  %v740_v59 = vld [vmem:[%s1184_s4 + $0x1] ss:$0 sm:$0xff]  ;;  %v748_v21 = vld [vmem:[%s1184_s4 + $0x2] ss:$0 sm:$0xff]  ;;  %s1030_s4 = smov [#allocation8]  }
  0x42   :  { %872 = vmatpush3.bf16.msra.mxu0 %v869_v12  ;;  %s716_s16 = sshll.u32 %s1030_s4, 4  ;;  %s717_s16 = int_to_ptr.vmem [resolvable:$true] %s716_s16 }
  0x43   :  { %874 = vmatprep.subr.bf16.mxu0 %v873_v19  ;;  %s997_s1 = scalar_lea.vmem %s717_s16, 256  ;;  %p1002_p11 = scmp.lt.s32.totalorder %s717_s16, %s717_s16 }
  0x44   :  { %p998_p10 = scmp.ne.s32.totalorder %s717_s16, %s997_s1  ;;  %p1003_p12 = scmp.lt.s32.totalorder %s997_s1, %s997_s1 }
  0x46   :  { %876 = vmatpush3.bf16.msra.mxu0 %v873_v19  ;;  %p1004_p13 = por %p1003_p12, %p1002_p11 }
  0x47   :  { %886 = vmatprep.subr.bf16.mxu0 %v885_v25 }
  0x48   :  { %p1005_p0 = pnand %p1004_p13, %p998_p10 }
 0x114   :  { %v797_v27 = vpop.f32.mrb[0].mxu0 }
 0x115   :  { %v159_v28 = vadd.f32 %v797_v27, %v729_v26  ;;  %v153_v29 = vpop.f32.mrb[1].mxu0 }
 0x116   :  { %v154_v30 = vadd.f32 %v729_v26, %v153_v29 }
 0x117   :  { %v163_v32 = vmax.f32 %v159_v28, 0.0 }
 0x118   :  { %v162_v31 = vmax.f32 %v154_v30, 0.0 }
 0x11a   :  { %806 = vmatprep.mubr.msk.f32.mxu1 %vm80_vm0, %v162_v31  ;;  %817 = vmatprep.mubr.msk.f32.mxu0 %vm80_vm0, %v162_v31 }
 0x11b   :  { %807 = vmatmul.mubr.msk.f32.vlgmr.msra.gmra.mrb[0].mxu1 %vm80_vm0, %v163_v32  ;;  %818 = vmatmul.mubr.msk.f32.vlgmr.msra.gmra.mrb[2].mxu0 %vm80_vm0, %v163_v32 }
 0x11c   :  { %880 = vmatpush3.bf16.msra.mxu1 %v877_v23  ;;  %888 = vmatpush3.bf16.msra.mxu0 %v885_v25 }
 0x11d   :  { %882 = vmatprep.subr.bf16.mxu1 %v881_v37  ;;  %890 = vmatprep.subr.bf16.mxu0 %v889_v38 }
 0x120   :  { %884 = vmatpush3.bf16.msra.mxu1 %v881_v37  ;;  %892 = vmatpush3.bf16.msra.mxu0 %v889_v38 }
 0x121   :  { %894 = vmatprep.subr.bf16.mxu1 %v893_v55 }
 0x1ee   :  { %v808_v41 = vpop.f32.mrb[0].mxu1  ;;  %v819_v42 = vpop.f32.mrb[2].mxu0 }
 0x1ef   :  { %v248_v43 = vadd.f32 %v808_v41, %v732_v39  ;;  %v373_v44 = vadd.f32 %v819_v42, %v737_v40  ;;  %v242_v45 = vpop.f32.mrb[1].mxu1  ;;  %v367_v46 = vpop.f32.mrb[3].mxu0 }
 0x1f0   :  { %v368_v47 = vadd.f32 %v737_v40, %v367_v46  ;;  %v243_v48 = vadd.f32 %v732_v39, %v242_v45 }
 0x1f1   :  { %v254_v49 = vsel %vm80_vm0, %v248_v43, -inf  ;;  %v377_v51 = vmax.f32 %v373_v44, 0.0 }
 0x1f2   :  { %v376_v50 = vmax.f32 %v368_v47, 0.0  ;;  %255 = vmax.xlane.f32.xlu0 %v254_v49  ;;  %v251_v52 = vsel %vm80_vm0, %v243_v48, -inf }
 0x1f4   :  { %828 = vmatprep.mubr.msk.f32.mxu1 %vm80_vm0, %v376_v50  ;;  %839 = vmatprep.mubr.msk.f32.mxu0 %vm80_vm0, %v376_v50 }
 0x1f5   :  { %829 = vmatmul.mubr.msk.f32.vlgmr.msra.gmra.mrb[2].mxu1 %vm80_vm0, %v377_v51  ;;  %840 = vmatmul.mubr.msk.f32.vlgmr.msra.gmra.mrb[4].mxu0 %vm80_vm0, %v377_v51 }
 0x1f6   :  { %252 = vmax.xlane.f32.xlu0 %v251_v52  ;;  %896 = vmatpush3.bf16.msra.mxu1 %v893_v55 }
 0x1f7   :  { %898 = vmatprep.subr.bf16.mxu1 %v897_v58 }
 0x1fa   :  { %900 = vmatpush3.bf16.msra.mxu1 %v897_v58 }
 0x27f   :  { %v256_v9 = vpop.xlane.xlu0 %255 }
 0x280   :  { %v258_v12 = vsub.f32 %v248_v43, %v256_v9 }
 0x282   :  { %v261_v15 = vmul.f32 1.442695, %v258_v12 }
 0x283   :  { %v253_v11 = vpop.xlane.xlu0 %252 }
 0x284   :  { %v257_v13 = vsub.f32 %v243_v48, %v253_v11  ;;  %907 = vpow2.f32 %v261_v15 }
 0x286   :  { %v259_v17 = vmul.f32 1.442695, %v257_v13 }
 0x288   :  { %909 = vpow2.f32 %v259_v17 }
 0x28e   :  { %v1148_v27 = vpop.eup %907 }
 0x28f   :  { %v266_v30 = vsel %vm80_vm0, %v1148_v27, 0.0 }
 0x292   :  { %v1151_v29 = vpop.eup %909 }
 0x293   :  { %v263_v32 = vsel %vm80_vm0, %v1151_v29, 0.0 }
 0x2c8   :  { %v830_v61 = vpop.f32.mrb[2].mxu1  ;;  %v841_v62 = vpop.f32.mrb[4].mxu0 }
 0x2c9   :  { %v462_v63 = vadd.f32 %v830_v61, %v740_v59  ;;  %v587_v0 = vadd.f32 %v841_v62, %v745_v60  ;;  %v456_v1 = vpop.f32.mrb[3].mxu1  ;;  %v581_v2 = vpop.f32.mrb[5].mxu0 }
 0x2ca   :  { %v582_v3 = vadd.f32 %v745_v60, %v581_v2  ;;  %v457_v4 = vadd.f32 %v740_v59, %v456_v1 }
 0x2cb   :  { %v468_v5 = vsel %vm80_vm0, %v462_v63, -inf  ;;  %v591_v7 = vmax.f32 %v587_v0, 0.0 }
 0x2cc   :  { %v590_v6 = vmax.f32 %v582_v3, 0.0  ;;  %469 = vmax.xlane.f32.xlu1 %v468_v5  ;;  %v465_v8 = vsel %vm80_vm0, %v457_v4, -inf }
 0x2ce   :  { %850 = vmatprep.mubr.msk.f32.mxu1 %vm80_vm0, %v590_v6 }
 0x2cf   :  { %851 = vmatmul.mubr.msk.f32.vlgmr.msra.gmra.mrb[4].mxu1 %vm80_vm0, %v591_v7 }
 0x2d0   :  { %466 = vmax.xlane.f32.xlu1 %v465_v8 }
 0x359   :  { %v470_v10 = vpop.xlane.xlu1 %469 }
 0x35a   :  { %v472_v16 = vsub.f32 %v462_v63, %v470_v10 }
 0x35c   :  { %v475_v19 = vmul.f32 1.442695, %v472_v16 }
 0x35d   :  { %v467_v14 = vpop.xlane.xlu1 %466 }
 0x35e   :  { %v471_v18 = vsub.f32 %v457_v4, %v467_v14  ;;  %911 = vpow2.f32 %v475_v19 }
 0x360   :  { %v473_v20 = vmul.f32 1.442695, %v471_v18 }
 0x362   :  { %913 = vpow2.f32 %v473_v20 }
 0x368   :  { %v912_v31 = vpop.eup %911 }
 0x369   :  { %v480_v34 = vsel %vm80_vm0, %v912_v31, 0.0 }
 0x36c   :  { %v914_v33 = vpop.eup %913 }
 0x36d   :  { %v477_v35 = vsel %vm80_vm0, %v914_v33, 0.0 }
 0x3a2   :  { %v852_v22 = vpop.f32.mrb[4].mxu1 }
 0x3a3   :  { %v676_v23 = vadd.f32 %v852_v22, %v748_v21  ;;  %v670_v24 = vpop.f32.mrb[5].mxu1 }
 0x3a4   :  { %v671_v25 = vadd.f32 %v748_v21, %v670_v24 }
 0x3a5   :  { %v682_v26 = vsel %vm80_vm0, %v676_v23, -inf }
 0x3a6   :  { %683 = vmax.xlane.f32.xlu1 %v682_v26  ;;  %v679_v28 = vsel %vm80_vm0, %v671_v25, -inf }
 0x3a7   :  { %680 = vmax.xlane.f32.xlu0 %v679_v28 }
 0x3aa   :  { %267 = vadd.xlane.f32.xlu1 %v266_v30 }
 0x3ab   :  { %264 = vadd.xlane.f32.xlu0 %v263_v32 }
 0x3ae   :  { %481 = vadd.xlane.f32.xlu1 %v480_v34 }
 0x3af   :  { %478 = vadd.xlane.f32.xlu0 %v477_v35 }
 0x433   :  { %v684_v36 = vpop.xlane.xlu1 %683 }
 0x434   :  { %v686_v37 = vsub.f32 %v676_v23, %v684_v36  ;;  %v681_v38 = vpop.xlane.xlu0 %680 }
 0x435   :  { %v685_v39 = vsub.f32 %v671_v25, %v681_v38 }
 0x436   :  { %v689_v40 = vmul.f32 1.442695, %v686_v37 }
 0x437   :  { %v687_v41 = vmul.f32 1.442695, %v685_v39  ;;  %v268_v46 = vpop.xlane.xlu1 %267 }
 0x438   :  { %915 = vpow2.f32 %v689_v40  ;;  %v265_v47 = vpop.xlane.xlu0 %264 }
 0x439   :  { %917 = vpow2.f32 %v687_v41 }
 0x43b   :  { %v482_v48 = vpop.xlane.xlu1 %481 }
 0x43c   :  { %v479_v49 = vpop.xlane.xlu0 %478  ;;  %919 = vrcp.f32 %v482_v48 }
 0x43d   :  { %921 = vrcp.f32 %v479_v49 }
 0x43e   :  { %923 = vrcp.f32 %v268_v46 }
 0x43f   :  { %925 = vrcp.f32 %v265_v47 }
 0x442   :  { %v916_v42 = vpop.eup %915 }
 0x443   :  { %v918_v43 = vpop.eup %917  ;;  %v694_v44 = vsel %vm80_vm0, %v916_v42, 0.0 }
 0x444   :  { %695 = vadd.xlane.f32.xlu1 %v694_v44  ;;  %v691_v45 = vsel %vm80_vm0, %v918_v43, 0.0 }
 0x445   :  { %692 = vadd.xlane.f32.xlu0 %v691_v45 }
 0x446   :  { %v920_v50 = vpop.eup %919 }
 0x447   :  { %v922_v51 = vpop.eup %921  ;;  %v486_v56 = vmul.f32 %v920_v50, %v482_v48 }
 0x448   :  { %v924_v53 = vpop.eup %923  ;;  %v485_v57 = vmul.f32 %v922_v51, %v479_v49 }
 0x449   :  { %v926_v55 = vpop.eup %925  ;;  %v272_v58 = vmul.f32 %v924_v53, %v268_v46  ;;  %v488_v60 = vsub.f32 2.0, %v486_v56 }
 0x44a   :  { %v271_v59 = vmul.f32 %v926_v55, %v265_v47  ;;  %v487_v61 = vsub.f32 2.0, %v485_v57 }
 0x44b   :  { %v274_v62 = vsub.f32 2.0, %v272_v58  ;;  %v490_v0 = vmul.f32 %v920_v50, %v488_v60 }
 0x44c   :  { %v273_v63 = vsub.f32 2.0, %v271_v59  ;;  %v489_v2 = vmul.f32 %v922_v51, %v487_v61 }
 0x44d   :  { %v276_v4 = vmul.f32 %v924_v53, %v274_v62  ;;  %v492_v8 = vmul.f32 %v912_v31, %v490_v0 }
 0x44e   :  { %v275_v6 = vmul.f32 %v926_v55, %v273_v63  ;;  %v491_v10 = vmul.f32 %v914_v33, %v489_v2 }
 0x44f   :  { %v278_v12 = vmul.f32 %v1148_v27, %v276_v4 }
 0x450   :  { %v277_v14 = vmul.f32 %v1151_v29, %v275_v6 }
 0x451   :  { %v494_v16 = vadd.f32 %v492_v8, %v278_v12 }
 0x452   :  { %v493_v18 = vadd.f32 %v491_v10, %v277_v14 }
 0x4d1   :  { %v696_v52 = vpop.xlane.xlu1 %695 }
 0x4d2   :  { %927 = vrcp.f32 %v696_v52  ;;  %v693_v54 = vpop.xlane.xlu0 %692 }
 0x4d3   :  { %929 = vrcp.f32 %v693_v54 }
 0x4dc   :  { %v928_v1 = vpop.eup %927 }
 0x4dd   :  { %v930_v3 = vpop.eup %929  ;;  %v700_v5 = vmul.f32 %v928_v1, %v696_v52 }
 0x4de   :  { %v699_v7 = vmul.f32 %v930_v3, %v693_v54 }
 0x4df   :  { %v702_v9 = vsub.f32 2.0, %v700_v5 }
 0x4e0   :  { %v701_v11 = vsub.f32 2.0, %v699_v7 }
 0x4e1   :  { %v704_v13 = vmul.f32 %v928_v1, %v702_v9 }
 0x4e2   :  { %v703_v15 = vmul.f32 %v930_v3, %v701_v11 }
 0x4e3   :  { %v706_v17 = vmul.f32 %v916_v42, %v704_v13 }
 0x4e4   :  { %v705_v19 = vmul.f32 %v918_v43, %v703_v15 }
 0x4e5   :  { %v708_v20 = vadd.f32 %v706_v17, %v494_v16 }
 0x4e6   :  { %v707_v21 = vadd.f32 %v705_v19, %v493_v18 }
 0x4e7   :  { %710 = vst.msk [vmem:[#allocation8 + $0x8] sm:$0xff] %vm80_vm0, %v708_v20 }
 0x4e8   :  { %709 = vst.msk [vmem:[#allocation8] sm:$0xff] %vm80_vm0, %v707_v21 }
 0x4e9   :  { %1008 = shalt.err (!%p1005_p0)
}
 0x4ea   :  { %s1009_s19 = scalar_lea.hbm %s1185_s5, 256 }
 0x4eb   :  { %p1010_p1 = scmp.ne.s32.totalorder %s1185_s5, %s1009_s19  ;;  %p1013_p2 = scmp.lt.u32.totalorder %s1009_s19, %s1185_s5 }
 0x4ed   :  { %p1015_p3 = pnand %p1013_p2, %p1010_p1 }
 0x4ef   :  { %1018 = shalt.err (!%p1015_p3)
}
 0x4f0   :  { %722 = dma.vmem_to_hbm [thread:$0]  %s717_s16, 256, %s1185_s5, [#allocation4], %s1027_s30, %s1027_s30, %s1028_s6  }
 0x4f1   :  { %1023 = dma.done.wait [#allocation4], 256  }
 0x4f2   :  { %1024 = vsyncadd [#allocation4], 4294967040 }
 0x4f3   :  { %726 = vsyncpa [#allocation3], 1 }
 0x4f4   :  { %727 = vsyncpa [#allocation6], 1 }
 0x4f5   :  { %728 = vsyncpa [#allocation4], 1 }

</bundles_post_ra>
